<compile_context>
chip_gen: v7x
topology: tpu7x:2x2x1
jax: 0.10.0
libtpu: 0.0.40
codegen_flags: <defaults>
</compile_context>

<pallas_src>
import jax
import jax.numpy as jnp
from jax.experimental import pallas as pl
from jax.experimental.pallas import tpu as pltpu

E = 32          # embedding_dim
B, V = 2, 16    # batch, variables-per-instance (shape of each list element)
N = 4           # number of tensors in the `inputs` list
BV = B * V      # rows per list item (32)
ROWS = N * BV   # 128 rows -> exactly 16 sublane tiles, fully aligned
EPS = 1e-12


# ----------------------------------------------------------------------------
# Fused kernel: linear(x, [W1|W2]) -> sigmoid(half1)+half2 -> L2-normalize
#               -> sum over the N list items.
# ----------------------------------------------------------------------------
def _ssc_kernel(x_ref, w_ref, b_ref, out_ref):
    # x_ref : (ROWS, E)   all N list items flattened, item-major row order
    # w_ref : (E, 2E)     [W1 | W2] packed along the output dim (host-side)
    # b_ref : (1, 2E)     [b1 | b2]
    x = x_ref[...]
    y = jnp.dot(x, w_ref[...], preferred_element_type=jnp.float32) + b_ref[...]
    y1 = y[:, :E]                               # layer1 pre-activation
    y2 = y[:, E:]                               # layer2 pre-activation
    z = jax.nn.sigmoid(y1) + y2                 # (ROWS, E)

    # utils.normalize -> L2 normalize along the embedding dim.
    norm = jnp.sqrt(jnp.sum(z * z, axis=-1, keepdims=True))
    z = z / jnp.maximum(norm, EPS)

    # torch.stack(out, dim=2).sum(dim=2).view(out[0].size()) == sum over list.
    acc = z[0:BV]
    for i in range(1, N):                       # static python loop, aligned slices
        acc = acc + z[i * BV:(i + 1) * BV]
    out_ref[...] = acc                          # (BV, E)


def symmetric_sum_combine(inputs_stacked, w_cat, b_cat):
    """inputs_stacked: (N, B, V, E) f32 -> (B, V, E) f32."""
    vmem = lambda: pl.BlockSpec(memory_space=pltpu.MemorySpace.VMEM)
    out = pl.pallas_call(
        _ssc_kernel,
        out_shape=jax.ShapeDtypeStruct((BV, E), jnp.float32),
        in_specs=[vmem(), vmem(), vmem()],
        out_specs=vmem(),
    )(inputs_stacked.reshape(ROWS, E), w_cat, b_cat)
    return out.reshape(B, V, E)


# ----------------------------------------------------------------------------
# Parameter setup (host-side packing) and pure-JAX reference.
# ----------------------------------------------------------------------------
def init_params(key):
    k1, k2, k3, k4 = jax.random.split(key, 4)
    n = lambda k, s: (0.1 * jax.random.normal(k, s)).astype(jnp.float32)
    w1, w2 = n(k1, (E, E)), n(k2, (E, E))       # (in_features, out_features)
    b1, b2 = n(k3, (E,)), n(k4, (E,))
    return dict(
        w1=w1, b1=b1, w2=w2, b2=b2,
        w_cat=jnp.concatenate([w1, w2], axis=1),          # (E, 2E)
        b_cat=jnp.concatenate([b1, b2])[None, :],         # (1, 2E)
    )


def reference_forward(inputs_stacked, p):
    outs = []
    for i in range(N):
        x = inputs_stacked[i]                                           # (B, V, E)
        y = jax.nn.sigmoid(x @ p["w1"] + p["b1"]) + (x @ p["w2"] + p["b2"])
        nrm = jnp.sqrt(jnp.sum(y * y, axis=-1, keepdims=True))
        outs.append(y / jnp.maximum(nrm, EPS))
    stacked = jnp.stack(outs, axis=2)                                   # (B, V, N, E)
    return stacked.sum(axis=2).reshape(outs[0].shape)                   # (B, V, E)


if __name__ == "__main__":
    key = jax.random.PRNGKey(0)
    k_x, k_p = jax.random.split(key)
    # `inputs` list of N tensors, each (B, V, E); stacked host-side.
    inputs_stacked = jax.random.normal(k_x, (N, B, V, E), dtype=jnp.float32)
    params = init_params(k_p)

    out = symmetric_sum_combine(inputs_stacked, params["w_cat"], params["b_cat"])
    out = jax.block_until_ready(out)
    assert out.shape == (B, V, E)

    ref = reference_forward(inputs_stacked, params)
    assert jnp.allclose(out, ref, atol=1e-5, rtol=1e-5), float(
        jnp.max(jnp.abs(out - ref)))
    print("KERNEL_OK")
</pallas_src>

<mosaic_0001>
module attributes {stable_mosaic.version = 11 : i64} {
  func.func @_ssc_kernel(%arg0: memref<128x32xf32, #tpu.memory_space<vmem>>, %arg1: memref<32x64xf32, #tpu.memory_space<vmem>>, %arg2: memref<1x64xf32, #tpu.memory_space<vmem>>, %arg3: memref<32x32xf32, #tpu.memory_space<vmem>>) attributes {dimension_semantics = [], scalar_prefetch = 0 : i64, scratch_operands = 0 : i64, tpu.core_type = #tpu.core_type<tc>} {
    %c0 = arith.constant 0 : index
    %c0_0 = arith.constant 0 : index
    %0 = vector.load %arg0[%c0, %c0_0] : memref<128x32xf32, #tpu.memory_space<vmem>>, vector<128x32xf32>
    %c0_1 = arith.constant 0 : index
    %c0_2 = arith.constant 0 : index
    %1 = vector.load %arg1[%c0_1, %c0_2] : memref<32x64xf32, #tpu.memory_space<vmem>>, vector<32x64xf32>
    %cst = arith.constant dense<0.000000e+00> : vector<128x64xf32>
    %2 = tpu.matmul %0, %1, %cst {dimension_numbers = #tpu.dot_dimension_numbers<[1], [0], [0], [1], [0, 0, 1, 1], [], []>} : vector<128x32xf32>, vector<32x64xf32>, vector<128x64xf32> -> vector<128x64xf32>
    %c0_3 = arith.constant 0 : index
    %c0_4 = arith.constant 0 : index
    %3 = vector.load %arg2[%c0_3, %c0_4] : memref<1x64xf32, #tpu.memory_space<vmem>>, vector<1x64xf32>
    %4 = vector.broadcast %3 : vector<1x64xf32> to vector<128x64xf32>
    %5 = arith.addf %2, %4 : vector<128x64xf32>
    %6 = vector.extract_strided_slice %5 {offsets = [0, 0], sizes = [128, 32], strides = [1, 1]} : vector<128x64xf32> to vector<128x32xf32>
    %7 = vector.extract_strided_slice %5 {offsets = [0, 32], sizes = [128, 32], strides = [1, 1]} : vector<128x64xf32> to vector<128x32xf32>
    %8 = arith.negf %6 : vector<128x32xf32>
    %9 = math.exp %8 : vector<128x32xf32>
    %cst_5 = arith.constant 1.000000e+00 : f32
    %10 = vector.broadcast %cst_5 : f32 to vector<128x32xf32>
    %11 = arith.addf %10, %9 : vector<128x32xf32>
    %12 = arith.divf %10, %11 : vector<128x32xf32>
    %13 = arith.addf %12, %7 : vector<128x32xf32>
    %14 = arith.mulf %13, %13 : vector<128x32xf32>
    %cst_6 = arith.constant dense<0.000000e+00> : vector<128xf32>
    %15 = vector.multi_reduction <add>, %14, %cst_6 [1] : vector<128x32xf32> to vector<128xf32>
    %16 = vector.shape_cast %15 : vector<128xf32> to vector<128x1xf32>
    %17 = math.sqrt %16 : vector<128x1xf32>
    %cst_7 = arith.constant 9.99999996E-13 : f32
    %18 = vector.broadcast %cst_7 : f32 to vector<128x1xf32>
    %19 = arith.maximumf %17, %18 : vector<128x1xf32>
    %20 = vector.broadcast %19 : vector<128x1xf32> to vector<128x32xf32>
    %21 = arith.divf %13, %20 : vector<128x32xf32>
    %22 = vector.extract_strided_slice %21 {offsets = [0, 0], sizes = [32, 32], strides = [1, 1]} : vector<128x32xf32> to vector<32x32xf32>
    %23 = vector.extract_strided_slice %21 {offsets = [32, 0], sizes = [32, 32], strides = [1, 1]} : vector<128x32xf32> to vector<32x32xf32>
    %24 = arith.addf %22, %23 : vector<32x32xf32>
    %25 = vector.extract_strided_slice %21 {offsets = [64, 0], sizes = [32, 32], strides = [1, 1]} : vector<128x32xf32> to vector<32x32xf32>
    %26 = arith.addf %24, %25 : vector<32x32xf32>
    %27 = vector.extract_strided_slice %21 {offsets = [96, 0], sizes = [32, 32], strides = [1, 1]} : vector<128x32xf32> to vector<32x32xf32>
    %28 = arith.addf %26, %27 : vector<32x32xf32>
    %c0_8 = arith.constant 0 : index
    %c0_9 = arith.constant 0 : index
    %29 = vector.load %arg3[%c0_8, %c0_9] : memref<32x32xf32, #tpu.memory_space<vmem>>, vector<32x32xf32>
    tpu.vector_store %arg3[%c0_8, %c0_9], %28 {strides = array<i32>} : memref<32x32xf32, #tpu.memory_space<vmem>>, vector<32x32xf32>,
    return
  }
}

</mosaic_0001>

<bundles_post_ra>
// kernel: tpu_custom_call.1
= control target key start
LH: loop header
LB: loop body
LE: loop exit
PB: predicated region body
PF: predicated region fallthrough
CT: control target
= control target key end

     0   :  { %vm42_vm0 = vcmask 261120   ;;  %s1300_s0 = inlined_call_operand.vmem [shape: f32[128,32], index: 0, kind: input, shape index: {}]   ;;  %s1301_s1 = inlined_call_operand.vmem [shape: f32[32,64], index: 1, kind: input, shape index: {}]   ;;  %s1302_s2 = inlined_call_operand.vmem [shape: f32[1,64], index: 2, kind: input, shape index: {}]   ;;  %s1303_s3 = inlined_call_operand.hbm [shape: f32[32,32], index: 3, kind: output, shape index: {}]  }
   0x1   :  { %v31_v0 = vld [vmem:[%s1301_s1] sm:$0xff]  ;;  %v32_v1 = vld [vmem:[%s1301_s1 + $0x8] sm:$0xff]  ;;  %v33_v2 = vld [vmem:[%s1301_s1 + $0x10] sm:$0xff] }
   0x2   :  { %v753_v3 = vpack.c.bf16 %v32_v1, %v31_v0  ;;  %v34_v4 = vld [vmem:[%s1301_s1 + $0x18] sm:$0xff]  ;;  %v15_v5 = vld [vmem:[%s1300_s0] sm:$0xff] }
   0x3   :  { %v23_v6 = vld [vmem:[%s1300_s0 + $0x40] sm:$0xff]  ;;  %v757_v7 = vpack.c.bf16 %v34_v4, %v33_v2  ;;  %729 = vmatprep.mubr.msk.f32.mxu0 %vm42_vm0, %v15_v5 }
   0x4   :  { %741 = vmatprep.mubr.msk.f32.mxu1 %vm42_vm0, %v23_v6  ;;  %754 = vmatprep.subr.bf16.mxu0 %v753_v3 }
   0x5   :  { %761 = vmatprep.subr.bf16.mxu1 %v753_v3  ;;  %756 = vmatpush3.bf16.msra.mxu0 %v753_v3 }
   0x6   :  { %763 = vmatpush3.bf16.msra.mxu1 %v753_v3  ;;  %758 = vmatprep.subr.bf16.mxu0 %v757_v7 }
   0x7   :  { %762 = vmatprep.subr.bf16.mxu1 %v757_v7 }
   0x8   :  { %8 = vsyncpa [#allocation3], 0  ;;  %v16_v8 = vld [vmem:[%s1300_s0 + $0x8] sm:$0xff]  ;;  %v17_v10 = vld [vmem:[%s1300_s0 + $0x10] sm:$0xff]  ;;  %s921_s25 = smov 96  }
   0x9   :  { %760 = vmatpush3.bf16.msra.mxu0 %v757_v7  ;;  %v24_v9 = vld [vmem:[%s1300_s0 + $0x48] sm:$0xff]  ;;  %v25_v11 = vld [vmem:[%s1300_s0 + $0x50] sm:$0xff]  ;;  %v18_v12 = vld [vmem:[%s1300_s0 + $0x18] sm:$0xff] }
   0xa   :  { %764 = vmatpush3.bf16.msra.mxu1 %v757_v7  ;;  %v26_v13 = vld [vmem:[%s1300_s0 + $0x58] sm:$0xff]  ;;  %v19_v14 = vld [vmem:[%s1300_s0 + $0x20] sm:$0xff]  ;;  %v20_v16 = vld [vmem:[%s1300_s0 + $0x28] sm:$0xff] }
   0xb   :  { %v27_v15 = vld [vmem:[%s1300_s0 + $0x60] sm:$0xff]  ;;  %v28_v17 = vld [vmem:[%s1300_s0 + $0x68] sm:$0xff]  ;;  %v21_v18 = vld [vmem:[%s1300_s0 + $0x30] sm:$0xff] }
   0xc   :  { %730 = vmatmul.mubr.msk.f32.vlgmr.msra.gmra.mrb[0].mxu0 %vm42_vm0, %v16_v8  ;;  %v29_v19 = vld [vmem:[%s1300_s0 + $0x70] sm:$0xff]  ;;  %v22_v20 = vld [vmem:[%s1300_s0 + $0x38] sm:$0xff]  ;;  %v668_v22 = vld [vmem:[%s1302_s2] ss:$0 sm:$0xff] }
   0xd   :  { %742 = vmatmul.mubr.msk.f32.vlgmr.msra.gmra.mrb[0].mxu1 %vm42_vm0, %v24_v9  ;;  %732 = vmatprep.mubr.msk.f32.mxu0 %vm42_vm0, %v17_v10  ;;  %v30_v21 = vld [vmem:[%s1300_s0 + $0x78] sm:$0xff]  ;;  %s922_s0 = smov [#allocation2]  }
   0xe   :  { %744 = vmatprep.mubr.msk.f32.mxu1 %vm42_vm0, %v25_v11  ;;  %s657_s2 = sshll.u32 %s922_s0, 4  ;;  %s658_s2 = int_to_ptr.vmem [resolvable:$true] %s657_s2 }
   0xf   :  { %s897_s26 = scalar_lea.vmem %s658_s2, 512  ;;  %p902_p1 = scmp.lt.s32.totalorder %s658_s2, %s658_s2 }
  0x10   :  { %733 = vmatmul.mubr.msk.f32.gmra.mrb[2].mxu0 %vm42_vm0, %v18_v12  ;;  %p898_p0 = scmp.ne.s32.totalorder %s658_s2, %s897_s26  ;;  %p903_p2 = scmp.lt.s32.totalorder %s897_s26, %s897_s26 }
  0x11   :  { %745 = vmatmul.mubr.msk.f32.gmra.mrb[2].mxu1 %vm42_vm0, %v26_v13  ;;  %735 = vmatprep.mubr.msk.f32.mxu0 %vm42_vm0, %v19_v14 }
  0x12   :  { %747 = vmatprep.mubr.msk.f32.mxu1 %vm42_vm0, %v27_v15  ;;  %p904_p3 = por %p903_p2, %p902_p1 }
  0x14   :  { %736 = vmatmul.mubr.msk.f32.gmra.mrb[4].mxu0 %vm42_vm0, %v20_v16  ;;  %p905_p4 = pnand %p904_p3, %p898_p0 }
  0x15   :  { %748 = vmatmul.mubr.msk.f32.gmra.mrb[4].mxu1 %vm42_vm0, %v28_v17  ;;  %738 = vmatprep.mubr.msk.f32.mxu0 %vm42_vm0, %v21_v18 }
  0x16   :  { %750 = vmatprep.mubr.msk.f32.mxu1 %vm42_vm0, %v29_v19 }
  0x18   :  { %739 = vmatmul.mubr.msk.f32.gmra.mrb[6].mxu0 %vm42_vm0, %v22_v20 }
  0x19   :  { %751 = vmatmul.mubr.msk.f32.gmra.mrb[6].mxu1 %vm42_vm0, %v30_v21 }
  0xdf   :  { %v731_v23 = vpop.f32.mrb[0].mxu0 }
  0xe0   :  { %v743_v24 = vpop.f32.mrb[0].mxu1  ;;  %v163_v25 = vadd.f32 %v731_v23, %v668_v22  ;;  %v157_v27 = vpop.f32.mrb[1].mxu0 }
  0xe1   :  { %v203_v26 = vadd.f32 %v743_v24, %v668_v22  ;;  %v197_v28 = vpop.f32.mrb[1].mxu1  ;;  %v158_v31 = vadd.f32 %v668_v22, %v157_v27 }
  0xe2   :  { %350 = vrot.lane.b32.xlu0 %v163_v25, %s921_s25  ;;  %v198_v38 = vadd.f32 %v668_v22, %v197_v28  ;;  %v686_v55 = vmul.f32 -1.442695, %v163_v25 }
  0xe3   :  { %366 = vrot.lane.b32.xlu1 %v203_v26, %s921_s25  ;;  %v734_v29 = vpop.f32.mrb[2].mxu0  ;;  %v694_v56 = vmul.f32 -1.442695, %v203_v26  ;;  %v685_v57 = vmul.f32 -1.442695, %v158_v31 }
  0xe4   :  { %v746_v30 = vpop.f32.mrb[2].mxu1  ;;  %v173_v32 = vadd.f32 %v734_v29, %v668_v22  ;;  %v167_v33 = vpop.f32.mrb[3].mxu0  ;;  %769 = vpow2.f32 %v686_v55  ;;  %v693_v59 = vmul.f32 -1.442695, %v198_v38 }
  0xe5   :  { %v207_v34 = vpop.f32.mrb[3].mxu1  ;;  %v213_v35 = vadd.f32 %v746_v30, %v668_v22  ;;  %v168_v44 = vadd.f32 %v668_v22, %v167_v33  ;;  %771 = vpow2.f32 %v694_v56 }
  0xe6   :  { %348 = vrot.lane.b32.xlu0 %v158_v31, %s921_s25  ;;  %v208_v41 = vadd.f32 %v668_v22, %v207_v34  ;;  %v688_v58 = vmul.f32 -1.442695, %v173_v32  ;;  %773 = vpow2.f32 %v685_v57 }
  0xe7   :  { %354 = vrot.lane.b32.xlu1 %v173_v32, %s921_s25  ;;  %v737_v36 = vpop.f32.mrb[4].mxu0  ;;  %v696_v60 = vmul.f32 -1.442695, %v213_v35  ;;  %v687_v61 = vmul.f32 -1.442695, %v168_v44 }
  0xe8   :  { %v749_v37 = vpop.f32.mrb[4].mxu1  ;;  %v177_v39 = vpop.f32.mrb[5].mxu0  ;;  %v183_v47 = vadd.f32 %v737_v36, %v668_v22  ;;  %775 = vpow2.f32 %v688_v58  ;;  %v695_v62 = vmul.f32 -1.442695, %v208_v41 }
  0xe9   :  { %v217_v40 = vpop.f32.mrb[5].mxu1  ;;  %v178_v48 = vadd.f32 %v668_v22, %v177_v39  ;;  %v223_v49 = vadd.f32 %v749_v37, %v668_v22  ;;  %777 = vpow2.f32 %v693_v59 }
  0xea   :  { %364 = vrot.lane.b32.xlu0 %v198_v38, %s921_s25  ;;  %v218_v50 = vadd.f32 %v668_v22, %v217_v40  ;;  %779 = vpow2.f32 %v696_v60  ;;  %v690_v1 = vmul.f32 -1.442695, %v183_v47 }
  0xeb   :  { %370 = vrot.lane.b32.xlu1 %v213_v35, %s921_s25  ;;  %v740_v42 = vpop.f32.mrb[6].mxu0  ;;  %781 = vpow2.f32 %v687_v61  ;;  %v689_v2 = vmul.f32 -1.442695, %v178_v48  ;;  %v698_v7 = vmul.f32 -1.442695, %v223_v49 }
  0xec   :  { %v752_v43 = vpop.f32.mrb[6].mxu1  ;;  %v187_v45 = vpop.f32.mrb[7].mxu0  ;;  %v193_v51 = vadd.f32 %v740_v42, %v668_v22  ;;  %783 = vpow2.f32 %v695_v62  ;;  %v697_v8 = vmul.f32 -1.442695, %v218_v50 }
  0xed   :  { %v227_v46 = vpop.f32.mrb[7].mxu1  ;;  %v188_v52 = vadd.f32 %v668_v22, %v187_v45  ;;  %v233_v53 = vadd.f32 %v752_v43, %v668_v22  ;;  %785 = vpow2.f32 %v690_v1 }
  0xee   :  { %368 = vrot.lane.b32.xlu0 %v208_v41, %s921_s25  ;;  %v228_v54 = vadd.f32 %v668_v22, %v227_v46  ;;  %v770_v63 = vpop.eup %769  ;;  %787 = vpow2.f32 %v689_v2  ;;  %v692_v13 = vmul.f32 -1.442695, %v193_v51 }
  0xef   :  { %352 = vrot.lane.b32.xlu1 %v168_v44, %s921_s25  ;;  %v772_v0 = vpop.eup %771  ;;  %v285_v3 = vadd.f32 1.0, %v770_v63  ;;  %v691_v16 = vmul.f32 -1.442695, %v188_v52  ;;  %v700_v19 = vmul.f32 -1.442695, %v233_v53 }
  0xf0   :  { %v774_v4 = vpop.eup %773  ;;  %v293_v5 = vadd.f32 1.0, %v772_v0  ;;  %v699_v22 = vmul.f32 -1.442695, %v228_v54 }
  0xf1   :  { %789 = vrcp.f32 %v285_v3  ;;  %v284_v10 = vadd.f32 1.0, %v774_v4 }
  0xf2   :  { %356 = vrot.lane.b32.xlu0 %v178_v48, %s921_s25  ;;  %v776_v6 = vpop.eup %775  ;;  %791 = vrcp.f32 %v293_v5 }
  0xf3   :  { %358 = vrot.lane.b32.xlu1 %v183_v47, %s921_s25  ;;  %v778_v9 = vpop.eup %777  ;;  %v287_v11 = vadd.f32 1.0, %v776_v6  ;;  %793 = vpow2.f32 %v698_v7 }
  0xf4   :  { %v780_v12 = vpop.eup %779  ;;  %v292_v14 = vadd.f32 1.0, %v778_v9  ;;  %795 = vpow2.f32 %v697_v8 }
  0xf5   :  { %v782_v15 = vpop.eup %781  ;;  %797 = vrcp.f32 %v284_v10  ;;  %v295_v17 = vadd.f32 1.0, %v780_v12 }
  0xf6   :  { %372 = vrot.lane.b32.xlu0 %v218_v50, %s921_s25  ;;  %799 = vrcp.f32 %v287_v11  ;;  %v784_v18 = vpop.eup %783  ;;  %v286_v20 = vadd.f32 1.0, %v782_v15 }
  0xf7   :  { %374 = vrot.lane.b32.xlu1 %v223_v49, %s921_s25  ;;  %801 = vpow2.f32 %v692_v13  ;;  %v786_v21 = vpop.eup %785  ;;  %v294_v24 = vadd.f32 1.0, %v784_v18 }
  0xf8   :  { %803 = vrcp.f32 %v292_v14  ;;  %v788_v23 = vpop.eup %787  ;;  %v289_v27 = vadd.f32 1.0, %v786_v21 }
  0xf9   :  { %805 = vpow2.f32 %v691_v16  ;;  %v288_v34 = vadd.f32 1.0, %v788_v23 }
  0xfa   :  { %360 = vrot.lane.b32.xlu0 %v188_v52, %s921_s25  ;;  %807 = vrcp.f32 %v295_v17 }
  0xfb   :  { %362 = vrot.lane.b32.xlu1 %v193_v51, %s921_s25  ;;  %v790_v25 = vpop.eup %789  ;;  %809 = vpow2.f32 %v700_v19 }
  0xfc   :  { %v792_v26 = vpop.eup %791  ;;  %811 = vrcp.f32 %v286_v20 }
  0xfd   :  { %v794_v30 = vpop.eup %793  ;;  %813 = vpow2.f32 %v699_v22 }
  0xfe   :  { %376 = vrot.lane.b32.xlu0 %v228_v54, %s921_s25  ;;  %v796_v33 = vpop.eup %795  ;;  %815 = vrcp.f32 %v294_v24  ;;  %v297_v39 = vadd.f32 1.0, %v794_v30 }
  0xff   :  { %378 = vrot.lane.b32.xlu1 %v233_v53, %s921_s25  ;;  %v798_v35 = vpop.eup %797  ;;  %817 = vrcp.f32 %v289_v27  ;;  %v296_v48 = vadd.f32 1.0, %v796_v33 }
 0x100   :  { %v800_v38 = vpop.eup %799  ;;  %819 = vrcp.f32 %v288_v34 }
 0x101   :  { %v802_v42 = vpop.eup %801  ;;  %821 = vrcp.f32 %v297_v39 }
 0x102   :  { %v804_v47 = vpop.eup %803  ;;  %v291_v52 = vadd.f32 1.0, %v802_v42  ;;  %823 = vrcp.f32 %v296_v48 }
 0x103   :  { %v806_v49 = vpop.eup %805 }
 0x104   :  { %v808_v51 = vpop.eup %807  ;;  %v290_v61 = vadd.f32 1.0, %v806_v49  ;;  %825 = vrcp.f32 %v291_v52 }
 0x105   :  { %v810_v56 = vpop.eup %809 }
 0x106   :  { %v812_v60 = vpop.eup %811  ;;  %v299_v1 = vadd.f32 1.0, %v810_v56  ;;  %827 = vrcp.f32 %v290_v61 }
 0x107   :  { %v814_v62 = vpop.eup %813 }
 0x108   :  { %v816_v0 = vpop.eup %815  ;;  %v298_v10 = vadd.f32 1.0, %v814_v62  ;;  %829 = vrcp.f32 %v299_v1 }
 0x109   :  { %v818_v9 = vpop.eup %817 }
 0x10a   :  { %v820_v12 = vpop.eup %819  ;;  %831 = vrcp.f32 %v298_v10 }
 0x10b   :  { %v822_v20 = vpop.eup %821 }
 0x10c   :  { %v824_v22 = vpop.eup %823 }
 0x10e   :  { %v826_v30 = vpop.eup %825 }
 0x110   :  { %v828_v34 = vpop.eup %827 }
 0x112   :  { %v830_v42 = vpop.eup %829 }
 0x154   :  { %v351_v29 = vpop.permute.xlu0 %350 }
 0x155   :  { %v367_v28 = vpop.permute.xlu1 %366  ;;  %v1042_v32 = vadd.f32 %v790_v25, %v351_v29 }
 0x156   :  { %v1040_v31 = vadd.f32 %v792_v26, %v367_v28 }
 0x157   :  { %v413_v36 = vmul.f32 %v1042_v32, %v1042_v32 }
 0x158   :  { %v421_v37 = vmul.f32 %v1040_v31, %v1040_v31  ;;  %v349_v41 = vpop.permute.xlu0 %348 }
 0x159   :  { %v355_v40 = vpop.permute.xlu1 %354  ;;  %v1050_v44 = vadd.f32 %v798_v35, %v349_v41  ;;  %v431_v45 = vsel %vm42_vm0, %v413_v36, 0.0 }
 0x15a   :  { %v1048_v43 = vadd.f32 %v800_v38, %v355_v40  ;;  %v455_v46 = vsel %vm42_vm0, %v421_v37, 0.0  ;;  %432 = vadd.xlane.f32.xlu1 %v431_v45 }
 0x15b   :  { %456 = vadd.xlane.f32.xlu0 %v455_v46  ;;  %v412_v50 = vmul.f32 %v1050_v44, %v1050_v44  ;;  %v832_v46 = vpop.eup %831 }
 0x15c   :  { %v365_v54 = vpop.permute.xlu0 %364  ;;  %v415_v55 = vmul.f32 %v1048_v43, %v1048_v43 }
 0x15d   :  { %v371_v53 = vpop.permute.xlu1 %370  ;;  %v1060_v58 = vadd.f32 %v804_v47, %v365_v54  ;;  %v428_v59 = vsel %vm42_vm0, %v412_v50, 0.0 }
 0x15e   :  { %v1058_v57 = vadd.f32 %v808_v51, %v371_v53  ;;  %v437_v4 = vsel %vm42_vm0, %v415_v55, 0.0 }
 0x15f   :  { %429 = vadd.xlane.f32.xlu0 %v428_v59  ;;  %v420_v63 = vmul.f32 %v1060_v58, %v1060_v58 }
 0x160   :  { %v369_v3 = vpop.permute.xlu0 %368  ;;  %v423_v8 = vmul.f32 %v1058_v57, %v1058_v57 }
 0x161   :  { %v353_v2 = vpop.permute.xlu1 %352  ;;  %v1068_v6 = vadd.f32 %v816_v0, %v369_v3  ;;  %v452_v7 = vsel %vm42_vm0, %v420_v63, 0.0 }
 0x162   :  { %v1066_v5 = vadd.f32 %v812_v60, %v353_v2  ;;  %453 = vadd.xlane.f32.xlu1 %v452_v7  ;;  %v461_v19 = vsel %vm42_vm0, %v423_v8, 0.0 }
 0x163   :  { %438 = vadd.xlane.f32.xlu0 %v437_v4  ;;  %v422_v11 = vmul.f32 %v1068_v6, %v1068_v6 }
 0x164   :  { %v357_v14 = vpop.permute.xlu0 %356  ;;  %v414_v15 = vmul.f32 %v1066_v5, %v1066_v5 }
 0x165   :  { %v359_v13 = vpop.permute.xlu1 %358  ;;  %v1079_v17 = vadd.f32 %v820_v12, %v357_v14  ;;  %v458_v18 = vsel %vm42_vm0, %v422_v11, 0.0 }
 0x166   :  { %v1077_v16 = vadd.f32 %v818_v9, %v359_v13  ;;  %459 = vadd.xlane.f32.xlu1 %v458_v18  ;;  %v434_v25 = vsel %vm42_vm0, %v414_v15, 0.0 }
 0x167   :  { %462 = vadd.xlane.f32.xlu0 %v461_v19  ;;  %v416_v21 = vmul.f32 %v1079_v17, %v1079_v17 }
 0x168   :  { %v373_v24 = vpop.permute.xlu0 %372  ;;  %v417_v29 = vmul.f32 %v1077_v16, %v1077_v16 }
 0x169   :  { %v375_v23 = vpop.permute.xlu1 %374  ;;  %v1088_v27 = vadd.f32 %v824_v22, %v373_v24  ;;  %v440_v28 = vsel %vm42_vm0, %v416_v21, 0.0 }
 0x16a   :  { %v1086_v26 = vadd.f32 %v822_v20, %v375_v23  ;;  %441 = vadd.xlane.f32.xlu1 %v440_v28  ;;  %v443_v41 = vsel %vm42_vm0, %v417_v29, 0.0 }
 0x16b   :  { %435 = vadd.xlane.f32.xlu0 %v434_v25  ;;  %v424_v33 = vmul.f32 %v1088_v27, %v1088_v27 }
 0x16c   :  { %v361_v36 = vpop.permute.xlu0 %360  ;;  %v425_v37 = vmul.f32 %v1086_v26, %v1086_v26 }
 0x16d   :  { %v363_v35 = vpop.permute.xlu1 %362  ;;  %v1099_v39 = vadd.f32 %v828_v34, %v361_v36  ;;  %v464_v40 = vsel %vm42_vm0, %v424_v33, 0.0 }
 0x16e   :  { %v1097_v38 = vadd.f32 %v826_v30, %v363_v35  ;;  %465 = vadd.xlane.f32.xlu1 %v464_v40  ;;  %v467_v49 = vsel %vm42_vm0, %v425_v37, 0.0 }
 0x16f   :  { %444 = vadd.xlane.f32.xlu0 %v443_v41  ;;  %v418_v45 = vmul.f32 %v1099_v39, %v1099_v39 }
 0x170   :  { %v377_v48 = vpop.permute.xlu0 %376  ;;  %v419_v53 = vmul.f32 %v1097_v38, %v1097_v38 }
 0x171   :  { %v379_v47 = vpop.permute.xlu1 %378  ;;  %v1108_v51 = vadd.f32 %v832_v46, %v377_v48  ;;  %v446_v52 = vsel %vm42_vm0, %v418_v45, 0.0 }
 0x172   :  { %v1106_v50 = vadd.f32 %v830_v42, %v379_v47  ;;  %447 = vadd.xlane.f32.xlu1 %v446_v52  ;;  %v449_v56 = vsel %vm42_vm0, %v419_v53, 0.0 }
 0x173   :  { %468 = vadd.xlane.f32.xlu0 %v467_v49  ;;  %v426_v54 = vmul.f32 %v1108_v51, %v1108_v51 }
 0x174   :  { %v427_v59 = vmul.f32 %v1106_v50, %v1106_v50 }
 0x175   :  { %v470_v55 = vsel %vm42_vm0, %v426_v54, 0.0 }
 0x176   :  { %471 = vadd.xlane.f32.xlu1 %v470_v55  ;;  %v473_v60 = vsel %vm42_vm0, %v427_v59, 0.0 }
 0x177   :  { %450 = vadd.xlane.f32.xlu0 %v449_v56 }
 0x17b   :  { %474 = vadd.xlane.f32.xlu0 %v473_v60 }
 0x1e7   :  { %v433_v61 = vpop.xlane.xlu1 %432 }
 0x1e8   :  { %v457_v62 = vpop.xlane.xlu0 %456  ;;  %833 = vrsqrt.f32 %v433_v61  ;;  %vm485_vm1 = vcmp.eq.f32.partialorder %v433_v61, inf  ;;  %vm487_vm2 = vcmp.eq.f32.partialorder %v433_v61, 0.0  ;;  %v488_v12 = vand.u32 2147483648, %v433_v61 }
 0x1e9   :  { %835 = vrsqrt.f32 %v457_v62  ;;  %vm541_vm3 = vcmp.eq.f32.partialorder %v457_v62, inf  ;;  %vm543_vm4 = vcmp.eq.f32.partialorder %v457_v62, 0.0  ;;  %v544_v14 = vand.u32 2147483648, %v457_v62 }
 0x1ec   :  { %v430_v63 = vpop.xlane.xlu0 %429 }
 0x1ed   :  { %837 = vrsqrt.f32 %v430_v63  ;;  %vm478_vm5 = vcmp.eq.f32.partialorder %v430_v63, inf  ;;  %vm480_vm6 = vcmp.eq.f32.partialorder %v430_v63, 0.0  ;;  %v481_v21 = vand.u32 2147483648, %v430_v63 }
 0x1ef   :  { %v454_v0 = vpop.xlane.xlu1 %453 }
 0x1f0   :  { %v1120_v1 = vpop.xlane.xlu0 %438  ;;  %839 = vrsqrt.f32 %v454_v0  ;;  %vm534_vm7 = vcmp.eq.f32.partialorder %v454_v0, inf  ;;  %vm536_vm8 = vcmp.eq.f32.partialorder %v454_v0, 0.0  ;;  %v537_v23 = vand.u32 2147483648, %v454_v0 }
 0x1f1   :  { %841 = vrsqrt.f32 %v1120_v1  ;;  %vm499_vm9 = vcmp.eq.f32.partialorder %v1120_v1, inf  ;;  %vm501_vm10 = vcmp.eq.f32.partialorder %v1120_v1, 0.0  ;;  %v502_v28 = vand.u32 2147483648, %v1120_v1 }
 0x1f2   :  { %v834_v2 = vpop.eup %833 }
 0x1f3   :  { %v836_v3 = vpop.eup %835  ;;  %v484_v4 = vmul.f32 %v834_v2, %v433_v61  ;;  %v1123_v7 = vpop.xlane.xlu1 %459 }
 0x1f4   :  { %v1125_v8 = vpop.xlane.xlu0 %462  ;;  %v540_v9 = vmul.f32 %v836_v3, %v457_v62  ;;  %843 = vrsqrt.f32 %v1123_v7  ;;  %vm548_vm11 = vcmp.eq.f32.partialorder %v1123_v7, inf  ;;  %vm550_vm12 = vcmp.eq.f32.partialorder %v1123_v7, 0.0 }
 0x1f5   :  { %v486_v10 = vsel %vm485_vm1, %v433_v61, %v484_v4  ;;  %845 = vrsqrt.f32 %v1125_v8  ;;  %v551_v42 = vand.u32 2147483648, %v1123_v7  ;;  %vm555_vm13 = vcmp.eq.f32.partialorder %v1125_v8, inf }
 0x1f6   :  { %v542_v13 = vsel %vm541_vm3, %v457_v62, %v540_v9  ;;  %v489_v20 = vsel %vm487_vm2, %v488_v12, %v486_v10  ;;  %v558_v47 = vand.u32 2147483648, %v1125_v8  ;;  %vm557_vm15 = vcmp.eq.f32.partialorder %v1125_v8, 0.0 }
 0x1f7   :  { %v838_v11 = vpop.eup %837  ;;  %v1129_v18 = vpop.xlane.xlu1 %441  ;;  %v545_v25 = vsel %vm543_vm4, %v544_v14, %v542_v13  ;;  %v589_v30 = vmax.f32 %v489_v20, 1e-12 }
 0x1f8   :  { %v477_v15 = vmul.f32 %v838_v11, %v430_v63  ;;  %v1131_v19 = vpop.xlane.xlu0 %435  ;;  %847 = vrsqrt.f32 %v1129_v18  ;;  %v597_v40 = vmax.f32 %v545_v25, 1e-12  ;;  %vm506_vm14 = vcmp.eq.f32.partialorder %v1129_v18, inf }
 0x1f9   :  { %849 = vrsqrt.f32 %v1131_v19  ;;  %vm508_vm1 = vcmp.eq.f32.partialorder %v1129_v18, 0.0  ;;  %v509_v56 = vand.u32 2147483648, %v1129_v18  ;;  %vm492_vm2 = vcmp.eq.f32.partialorder %v1131_v19, inf }
 0x1fa   :  { %v479_v22 = vsel %vm478_vm5, %v430_v63, %v477_v15  ;;  %v840_v24 = vpop.eup %839  ;;  %vm494_vm3 = vcmp.eq.f32.partialorder %v1131_v19, 0.0  ;;  %v495_v60 = vand.u32 2147483648, %v1131_v19 }
 0x1fb   :  { %v842_v29 = vpop.eup %841  ;;  %v482_v33 = vsel %vm480_vm6, %v481_v21, %v479_v22  ;;  %v533_v34 = vmul.f32 %v840_v24, %v454_v0  ;;  %v1139_v35 = vpop.xlane.xlu1 %465 }
 0x1fc   :  { %v1141_v36 = vpop.xlane.xlu0 %444  ;;  %v498_v37 = vmul.f32 %v842_v29, %v1120_v1  ;;  %851 = vrsqrt.f32 %v1139_v35  ;;  %v588_v46 = vmax.f32 %v482_v33, 1e-12  ;;  %vm562_vm4 = vcmp.eq.f32.partialorder %v1139_v35, inf }
 0x1fd   :  { %v535_v41 = vsel %vm534_vm7, %v454_v0, %v533_v34  ;;  %853 = vrsqrt.f32 %v1141_v36  ;;  %vm564_vm5 = vcmp.eq.f32.partialorder %v1139_v35, 0.0  ;;  %v565_v9 = vand.u32 2147483648, %v1139_v35 }
 0x1fe   :  { %v844_v45 = vpop.eup %843  ;;  %855 = vrcp.f32 %v589_v30  ;;  %v538_v49 = vsel %vm536_vm8, %v537_v23, %v535_v41  ;;  %v500_v55 = vsel %vm499_vm9, %v1120_v1, %v498_v37  ;;  %vm513_vm6 = vcmp.eq.f32.partialorder %v1141_v36, inf }
 0x1ff   :  { %v846_v48 = vpop.eup %845  ;;  %v547_v52 = vmul.f32 %v844_v45, %v1123_v7  ;;  %v1157_v53 = vpop.xlane.xlu1 %447  ;;  %v596_v62 = vmax.f32 %v538_v49, 1e-12  ;;  %v503_v0 = vsel %vm501_vm10, %v502_v28, %v500_v55  ;;  %vm515_vm7 = vcmp.eq.f32.partialorder %v1141_v36, 0.0 }
 0x200   :  { %v1159_v54 = vpop.xlane.xlu0 %468  ;;  %857 = vrsqrt.f32 %v1157_v53  ;;  %v554_v59 = vmul.f32 %v846_v48, %v1125_v8  ;;  %v516_v13 = vand.u32 2147483648, %v1141_v36  ;;  %v591_v15 = vmax.f32 %v503_v0, 1e-12 }
 0x201   :  { %859 = vrcp.f32 %v597_v40  ;;  %v549_v63 = vsel %vm548_vm11, %v1123_v7, %v547_v52  ;;  %vm520_vm8 = vcmp.eq.f32.partialorder %v1157_v53, inf  ;;  %vm522_vm9 = vcmp.eq.f32.partialorder %v1157_v53, 0.0 }
 0x202   :  { %v848_v61 = vpop.eup %847  ;;  %861 = vrcp.f32 %v588_v46  ;;  %v552_v10 = vsel %vm550_vm12, %v551_v42, %v549_v63  ;;  %v556_v11 = vsel %vm555_vm13, %v1125_v8, %v554_v59  ;;  %v523_v41 = vand.u32 2147483648, %v1157_v53 }
 0x203   :  { %v505_v2 = vmul.f32 %v848_v61, %v1129_v18  ;;  %863 = vrsqrt.f32 %v1159_v54  ;;  %v1179_v3 = vpop.xlane.xlu1 %471  ;;  %v850_v1 = vpop.eup %849  ;;  %v598_v25 = vmax.f32 %v552_v10, 1e-12  ;;  %v1206_v28 = vsel %vm557_vm15, %v558_v47, %v556_v11 }
 0x204   :  { %v1181_v4 = vpop.xlane.xlu0 %450  ;;  %865 = vrsqrt.f32 %v1179_v3  ;;  %v491_v21 = vmul.f32 %v850_v1, %v1131_v19  ;;  %v599_v48 = vmax.f32 %v1206_v28, 1e-12  ;;  %vm569_vm10 = vcmp.eq.f32.partialorder %v1159_v54, inf }
 0x205   :  { %v507_v12 = vsel %vm506_vm14, %v1129_v18, %v505_v2  ;;  %867 = vrcp.f32 %v596_v62  ;;  %vm571_vm11 = vcmp.eq.f32.partialorder %v1159_v54, 0.0  ;;  %vm576_vm12 = vcmp.eq.f32.partialorder %v1179_v3, inf }
 0x206   :  { %v852_v14 = vpop.eup %851  ;;  %v510_v20 = vsel %vm508_vm1, %v509_v56, %v507_v12  ;;  %869 = vrsqrt.f32 %v1181_v4  ;;  %v493_v18 = vsel %vm492_vm2, %v1131_v19, %v491_v21  ;;  %vm578_vm13 = vcmp.eq.f32.partialorder %v1179_v3, 0.0 }
 0x207   :  { %v592_v7 = vmax.f32 %v510_v20, 1e-12  ;;  %v561_v22 = vmul.f32 %v852_v14, %v1139_v35  ;;  %v854_v24 = vpop.eup %853  ;;  %v496_v30 = vsel %vm494_vm3, %v495_v60, %v493_v18  ;;  %vm527_vm14 = vcmp.eq.f32.partialorder %v1181_v4, inf }
 0x208   :  { %v1202_v23 = vpop.xlane.xlu0 %474  ;;  %v1212_v29 = vpop.eup %855  ;;  %v512_v8 = vmul.f32 %v854_v24, %v1141_v36  ;;  %v590_v37 = vmax.f32 %v496_v30, 1e-12  ;;  %vm529_vm15 = vcmp.eq.f32.partialorder %v1181_v4, 0.0  ;;  %v530_v14 = vand.u32 2147483648, %v1181_v4 }
 0x209   :  { %871 = vrsqrt.f32 %v1202_v23  ;;  %v563_v33 = vsel %vm562_vm4, %v1139_v35, %v561_v22  ;;  %vm583_vm1 = vcmp.eq.f32.partialorder %v1202_v23, inf  ;;  %vm585_vm2 = vcmp.eq.f32.partialorder %v1202_v23, 0.0 }
 0x20a   :  { %873 = vrcp.f32 %v592_v7  ;;  %v858_v34 = vpop.eup %857  ;;  %v566_v40 = vsel %vm564_vm5, %v565_v9, %v563_v33  ;;  %v514_v45 = vsel %vm513_vm6, %v1141_v36, %v512_v8  ;;  %v572_v36 = vand.u32 2147483648, %v1159_v54 }
 0x20b   :  { %v1224_v42 = vpop.eup %859  ;;  %875 = vrcp.f32 %v591_v15  ;;  %v600_v19 = vmax.f32 %v566_v40, 1e-12  ;;  %v519_v46 = vmul.f32 %v858_v34, %v1157_v53  ;;  %v517_v35 = vsel %vm515_vm7, %v516_v13, %v514_v45 }
 0x20c   :  { %v862_v47 = vpop.eup %861  ;;  %877 = vrcp.f32 %v598_v25  ;;  %v593_v52 = vmax.f32 %v517_v35, 1e-12 }
 0x20d   :  { %v864_v49 = vpop.eup %863  ;;  %879 = vrcp.f32 %v600_v19  ;;  %v521_v55 = vsel %vm520_vm8, %v1157_v53, %v519_v46  ;;  %v579_v53 = vand.u32 2147483648, %v1179_v3  ;;  %v605_v7 = vmul.f32 %v862_v47, %v1050_v44 }
 0x20e   :  { %v866_v56 = vpop.eup %865  ;;  %881 = vrcp.f32 %v590_v37  ;;  %v524_v59 = vsel %vm522_vm9, %v523_v41, %v521_v55  ;;  %v568_v60 = vmul.f32 %v864_v49, %v1159_v54  ;;  %v607_v19 = vmul.f32 %v1212_v29, %v1042_v32 }
 0x20f   :  { %883 = vrcp.f32 %v593_v52  ;;  %v594_v61 = vmax.f32 %v524_v59, 1e-12  ;;  %v575_v62 = vmul.f32 %v866_v56, %v1179_v3  ;;  %v868_v63 = vpop.eup %867 }
 0x210   :  { %v570_v0 = vsel %vm569_vm10, %v1159_v54, %v568_v60  ;;  %v870_v2 = vpop.eup %869  ;;  %v586_v54 = vand.u32 2147483648, %v1202_v23  ;;  %v621_v8 = vmul.f32 %v868_v63, %v1060_v58 }
 0x211   :  { %885 = vrcp.f32 %v594_v61  ;;  %v573_v9 = vsel %vm571_vm11, %v572_v36, %v570_v0  ;;  %v577_v1 = vsel %vm576_vm12, %v1179_v3, %v575_v62  ;;  %v526_v13 = vmul.f32 %v870_v2, %v1181_v4 }
 0x212   :  { %v601_v11 = vmax.f32 %v573_v9, 1e-12  ;;  %v580_v12 = vsel %vm578_vm13, %v579_v53, %v577_v1 }
 0x213   :  { %v872_v10 = vpop.eup %871  ;;  %v602_v20 = vmax.f32 %v580_v12, 1e-12  ;;  %v528_v3 = vsel %vm527_vm14, %v1181_v4, %v526_v13 }
 0x214   :  { %v874_v15 = vpop.eup %873  ;;  %v582_v21 = vmul.f32 %v872_v10, %v1202_v23  ;;  %887 = vrcp.f32 %v601_v11  ;;  %v531_v25 = vsel %vm529_vm15, %v530_v14, %v528_v3 }
 0x215   :  { %v613_v22 = vmul.f32 %v874_v15, %v1079_v17  ;;  %v876_v24 = vpop.eup %875  ;;  %889 = vrcp.f32 %v602_v20  ;;  %v595_v30 = vmax.f32 %v531_v25, 1e-12 }
 0x216   :  { %v584_v28 = vsel %vm583_vm1, %v1202_v23, %v582_v21  ;;  %v878_v18 = vpop.eup %877  ;;  %891 = vrcp.f32 %v599_v48  ;;  %v623_v48 = vmul.f32 %v1224_v42, %v1040_v31  ;;  %v611_v31 = vmul.f32 %v876_v24, %v1048_v43 }
 0x217   :  { %v587_v33 = vsel %vm585_vm2, %v586_v54, %v584_v28  ;;  %v636_v34 = vadd.f32 %v613_v22, %v605_v7  ;;  %v880_v37 = vpop.eup %879  ;;  %893 = vrcp.f32 %v595_v30  ;;  %v625_v49 = vmul.f32 %v878_v18, %v1068_v6 }
 0x218   :  { %v603_v44 = vmax.f32 %v587_v33, 1e-12  ;;  %v882_v40 = vpop.eup %881  ;;  %v629_v17 = vmul.f32 %v880_v37, %v1088_v27 }
 0x219   :  { %v640_v41 = vadd.f32 %v636_v34, %v621_v8  ;;  %v884_v4 = vpop.eup %883  ;;  %v609_v58 = vmul.f32 %v882_v40, %v1066_v5 }
 0x21a   :  { %895 = vrcp.f32 %v603_v44  ;;  %v615_v23 = vmul.f32 %v884_v4, %v1077_v16 }
 0x21b   :  { %v644_v45 = vadd.f32 %v640_v41, %v629_v17  ;;  %v886_v46 = vpop.eup %885 }
 0x21c   :  { %v617_v47 = vmul.f32 %v886_v46, %v1099_v39  ;;  %v637_v35 = vadd.f32 %v615_v23, %v607_v19 }
 0x21d   :  { %648 = vst.msk [vmem:[#allocation2] sm:$0xff] %vm42_vm0, %v644_v45 }
 0x21e   :  { %v888_v27 = vpop.eup %887  ;;  %v638_v52 = vadd.f32 %v617_v47, %v609_v58  ;;  %v641_v55 = vadd.f32 %v637_v35, %v623_v48 }
 0x21f   :  { %v890_v32 = vpop.eup %889  ;;  %v631_v16 = vmul.f32 %v888_v27, %v1086_v26 }
 0x220   :  { %v633_v29 = vmul.f32 %v890_v32, %v1108_v51  ;;  %v642_v56 = vadd.f32 %v638_v52, %v625_v49  ;;  %v892_v5 = vpop.eup %891 }
 0x221   :  { %v645_v59 = vadd.f32 %v641_v55, %v631_v16  ;;  %v894_v39 = vpop.eup %893  ;;  %v627_v6 = vmul.f32 %v892_v5, %v1058_v57 }
 0x222   :  { %v646_v60 = vadd.f32 %v642_v56, %v633_v29  ;;  %v619_v42 = vmul.f32 %v894_v39, %v1097_v38 }
 0x223   :  { %649 = vst.msk [vmem:[#allocation2 + $0x8] sm:$0xff] %vm42_vm0, %v645_v59 }
 0x224   :  { %v896_v36 = vpop.eup %895  ;;  %650 = vst.msk [vmem:[#allocation2 + $0x10] sm:$0xff] %vm42_vm0, %v646_v60  ;;  %v639_v61 = vadd.f32 %v619_v42, %v611_v31 }
 0x225   :  { %v635_v26 = vmul.f32 %v896_v36, %v1106_v50 }
 0x226   :  { %v643_v51 = vadd.f32 %v639_v61, %v627_v6 }
 0x228   :  { %v647_v62 = vadd.f32 %v643_v51, %v635_v26 }
 0x22a   :  { %651 = vst.msk [vmem:[#allocation2 + $0x18] sm:$0xff] %vm42_vm0, %v647_v62 }
 0x22b   :  { %908 = shalt.err (!%p905_p4)
}
 0x22c   :  { %s909_s29 = scalar_lea.hbm %s1303_s3, 512 }
 0x22d   :  { %p910_p5 = scmp.ne.s32.totalorder %s1303_s3, %s909_s29  ;;  %p913_p6 = scmp.lt.u32.totalorder %s909_s29, %s1303_s3 }
 0x22f   :  { %p915_p7 = pnand %p913_p6, %p910_p5 }
 0x231   :  { %918 = shalt.err (!%p915_p7)
}
 0x232   :  { %s923_s7 = smov 128   ;;  %s924_s8 = smov 8  }
 0x233   :  { %663 = dma.vmem_to_hbm [thread:$0]  %s658_s2, 512, %s1303_s3, [#allocation3], %s923_s7, %s923_s7, %s924_s8  }
 0x234   :  { %919 = dma.done.wait [#allocation3], 512  }
 0x235   :  { %920 = vsyncadd [#allocation3], 4294966784 }
 0x236   :  { %667 = vsyncpa [#allocation3], 1 }

</bundles_post_ra>
